<compile_context>
chip_gen: v7x
topology: tpu7x:2x2x1
jax: 0.10.0
libtpu: 0.0.40
codegen_flags: <defaults>
</compile_context>

<pallas_src>
import functools

import jax
import jax.numpy as jnp
from jax.experimental import pallas as pl
from jax.experimental.pallas import tpu as pltpu


def rnn_kernel(x_ref, wih_ref, whh_ref, b_ref, w1_ref, b1_ref, w2_ref, b2_ref,
               out_ref, pre_ref, *, B, B_pad, T):
    # Hoisted input projection for ALL timesteps in one MXU matmul.
    # Rows [t*B_pad, (t+1)*B_pad) of pre_ref hold
    #   x[:, t, :] @ W_ih^T + (b_ih + b_hh)  for the sublane-padded batch.
    pre_ref[...] = (jnp.dot(x_ref[...], wih_ref[...],
                            preferred_element_type=jnp.float32) + b_ref[...])

    # Loop-invariant recurrent weight: load from VMEM once, keep in vregs.
    whh = whh_ref[...]                                          # (H, H) f32

    # Serial recurrence over time, fully unrolled (T is small and static).
    # Slice starts t*B_pad are static multiples of 8 -> tile-aligned sublane
    # reads, nothing masked on the critical path.
    h = jnp.zeros((B_pad, whh.shape[0]), jnp.float32)
    for t in range(T):
        pre_t = pre_ref[pl.ds(t * B_pad, B_pad), :]             # (B_pad, H)
        h = jnp.tanh(pre_t + jnp.dot(h, whh,
                                     preferred_element_type=jnp.float32))

    # Fused FC head on the final hidden state (runs exactly once).
    z = jnp.tanh(jnp.dot(h, w1_ref[...],
                         preferred_element_type=jnp.float32) + b1_ref[...])
    # fc2 is (F1 -> 1): VPU multiply + lane reduction instead of an N=1 matmul.
    y = jnp.sum(z * w2_ref[...], axis=-1, keepdims=True) + b2_ref[...]
    out_ref[...] = y[:B, :].astype(out_ref.dtype)


def simple_rnn_forward(x, params):
    """x: (B, T, I) float32, batch-first as in the PyTorch module."""
    B, T, I = x.shape
    H = params["w_ih_t"].shape[1]
    F1 = params["w1_t"].shape[1]
    B_pad = max(8, ((B + 7) // 8) * 8)

    # Time-major + pad batch to a full sublane tile so per-step reads align.
    # TODO(synk): if T*B*I scales, produce x time-major upstream to drop this
    #             wrapper-side transpose/pad HBM round trip.
    x_t = jnp.transpose(x, (1, 0, 2))                           # (T, B, I)
    x_t = jnp.pad(x_t, ((0, 0), (0, B_pad - B), (0, 0)))        # (T, B_pad, I)
    x_tb = x_t.reshape(T * B_pad, I)

    wih_t = params["w_ih_t"]                                    # (I, H)  = W_ih^T
    whh_t = params["w_hh_t"]                                    # (H, H)  = W_hh^T
    b = (params["b_ih"] + params["b_hh"]).reshape(1, H)         # combined RNN bias
    w1_t = params["w1_t"]                                       # (H, F1)
    b1 = params["b1"].reshape(1, F1)
    w2_row = params["w2_t"].reshape(1, F1)                      # fc2 weight as row
    b2 = params["b2"].reshape(1, 1)

    kernel = functools.partial(rnn_kernel, B=B, B_pad=B_pad, T=T)
    vmem = lambda: pl.BlockSpec(memory_space=pltpu.MemorySpace.VMEM)
    return pl.pallas_call(
        kernel,
        out_shape=jax.ShapeDtypeStruct((B, 1), jnp.float32),
        in_specs=[vmem() for _ in range(8)],
        out_specs=vmem(),
        scratch_shapes=[pltpu.VMEM((T * B_pad, H), jnp.float32)],  # hoisted x-projection
    )(x_tb, wih_t, whh_t, b, w1_t, b1, w2_row, b2)


def ref_forward(x, params):
    """Pure-JAX reference matching the PyTorch forward."""
    B, T, _ = x.shape
    H = params["w_ih_t"].shape[1]
    h = jnp.zeros((B, H), jnp.float32)
    for t in range(T):
        h = jnp.tanh(x[:, t, :] @ params["w_ih_t"] + params["b_ih"]
                     + h @ params["w_hh_t"] + params["b_hh"])
    z = jnp.tanh(h @ params["w1_t"] + params["b1"])
    return z @ params["w2_t"] + params["b2"]


def init_params(key, input_size, hidden_size, fc1_size=20):
    ks = jax.random.split(key, 8)
    u = lambda k, shape, a: jax.random.uniform(k, shape, jnp.float32, -a, a)
    bound_h = 1.0 / jnp.sqrt(hidden_size)
    bound_f = 1.0 / jnp.sqrt(fc1_size)
    return {
        # nn.RNN weights: uniform(-0.1, 0.1) as in the module's __init__
        "w_ih_t": u(ks[0], (input_size, hidden_size), 0.1),     # (I, H) = W_ih^T
        "w_hh_t": u(ks[1], (hidden_size, hidden_size), 0.1),    # (H, H) = W_hh^T
        "b_ih": u(ks[2], (hidden_size,), bound_h),
        "b_hh": u(ks[3], (hidden_size,), bound_h),
        # fc1: Linear(hidden, 20), fc2: Linear(20, 1) — default torch init
        "w1_t": u(ks[4], (hidden_size, fc1_size), bound_h),
        "b1": u(ks[5], (fc1_size,), bound_h),
        "w2_t": u(ks[6], (fc1_size, 1), bound_f),
        "b2": u(ks[7], (1,), bound_f),
    }


if __name__ == "__main__":
    key = jax.random.PRNGKey(0)
    B, T, I, H = 2, 8, 16, 32
    kx, kp = jax.random.split(key)
    x = jax.random.normal(kx, (B, T, I), jnp.float32)
    params = init_params(kp, I, H)

    out = simple_rnn_forward(x, params)
    jax.block_until_ready(out)
    assert out.shape == (B, 1)

    expected = ref_forward(x, params)
    assert jnp.allclose(out, expected, rtol=1e-4, atol=1e-4), (out, expected)
    print("KERNEL_OK")
</pallas_src>

<mosaic_0001>
module attributes {stable_mosaic.version = 11 : i64} {
  func.func @rnn_kernel(%arg0: memref<64x16xf32, #tpu.memory_space<vmem>>, %arg1: memref<16x32xf32, #tpu.memory_space<vmem>>, %arg2: memref<32x32xf32, #tpu.memory_space<vmem>>, %arg3: memref<1x32xf32, #tpu.memory_space<vmem>>, %arg4: memref<32x20xf32, #tpu.memory_space<vmem>>, %arg5: memref<1x20xf32, #tpu.memory_space<vmem>>, %arg6: memref<1x20xf32, #tpu.memory_space<vmem>>, %arg7: memref<1x1xf32, #tpu.memory_space<vmem>>, %arg8: memref<2x1xf32, #tpu.memory_space<vmem>>, %arg9: memref<64x32xf32, #tpu.memory_space<vmem>>) attributes {dimension_semantics = [], scalar_prefetch = 0 : i64, scratch_operands = 1 : i64, tpu.core_type = #tpu.core_type<tc>} {
    %c0 = arith.constant 0 : index
    %c0_0 = arith.constant 0 : index
    %0 = vector.load %arg0[%c0, %c0_0] : memref<64x16xf32, #tpu.memory_space<vmem>>, vector<64x16xf32>
    %c0_1 = arith.constant 0 : index
    %c0_2 = arith.constant 0 : index
    %1 = vector.load %arg1[%c0_1, %c0_2] : memref<16x32xf32, #tpu.memory_space<vmem>>, vector<16x32xf32>
    %cst = arith.constant dense<0.000000e+00> : vector<64x32xf32>
    %2 = tpu.matmul %0, %1, %cst {dimension_numbers = #tpu.dot_dimension_numbers<[1], [0], [0], [1], [0, 0, 1, 1], [], []>} : vector<64x16xf32>, vector<16x32xf32>, vector<64x32xf32> -> vector<64x32xf32>
    %c0_3 = arith.constant 0 : index
    %c0_4 = arith.constant 0 : index
    %3 = vector.load %arg3[%c0_3, %c0_4] : memref<1x32xf32, #tpu.memory_space<vmem>>, vector<1x32xf32>
    %4 = vector.broadcast %3 : vector<1x32xf32> to vector<64x32xf32>
    %5 = arith.addf %2, %4 : vector<64x32xf32>
    %c0_5 = arith.constant 0 : index
    %c0_6 = arith.constant 0 : index
    %6 = vector.load %arg9[%c0_5, %c0_6] : memref<64x32xf32, #tpu.memory_space<vmem>>, vector<64x32xf32>
    tpu.vector_store %arg9[%c0_5, %c0_6], %5 {strides = array<i32>} : memref<64x32xf32, #tpu.memory_space<vmem>>, vector<64x32xf32>,
    %c0_7 = arith.constant 0 : index
    %c0_8 = arith.constant 0 : index
    %7 = vector.load %arg2[%c0_7, %c0_8] : memref<32x32xf32, #tpu.memory_space<vmem>>, vector<32x32xf32>
    %cst_9 = arith.constant 0.000000e+00 : f32
    %8 = vector.broadcast %cst_9 : f32 to vector<8x32xf32>
    %c0_10 = arith.constant 0 : index
    %c0_11 = arith.constant 0 : index
    %9 = vector.load %arg9[%c0_10, %c0_11] : memref<64x32xf32, #tpu.memory_space<vmem>>, vector<8x32xf32>
    %cst_12 = arith.constant dense<0.000000e+00> : vector<8x32xf32>
    %10 = tpu.matmul %8, %7, %cst_12 {dimension_numbers = #tpu.dot_dimension_numbers<[1], [0], [0], [1], [0, 0, 1, 1], [], []>} : vector<8x32xf32>, vector<32x32xf32>, vector<8x32xf32> -> vector<8x32xf32>
    %11 = arith.addf %9, %10 : vector<8x32xf32>
    %12 = math.tanh %11 : vector<8x32xf32>
    %c8 = arith.constant 8 : index
    %c0_13 = arith.constant 0 : index
    %13 = vector.load %arg9[%c8, %c0_13] : memref<64x32xf32, #tpu.memory_space<vmem>>, vector<8x32xf32>
    %cst_14 = arith.constant dense<0.000000e+00> : vector<8x32xf32>
    %14 = tpu.matmul %12, %7, %cst_14 {dimension_numbers = #tpu.dot_dimension_numbers<[1], [0], [0], [1], [0, 0, 1, 1], [], []>} : vector<8x32xf32>, vector<32x32xf32>, vector<8x32xf32> -> vector<8x32xf32>
    %15 = arith.addf %13, %14 : vector<8x32xf32>
    %16 = math.tanh %15 : vector<8x32xf32>
    %c16 = arith.constant 16 : index
    %c0_15 = arith.constant 0 : index
    %17 = vector.load %arg9[%c16, %c0_15] : memref<64x32xf32, #tpu.memory_space<vmem>>, vector<8x32xf32>
    %cst_16 = arith.constant dense<0.000000e+00> : vector<8x32xf32>
    %18 = tpu.matmul %16, %7, %cst_16 {dimension_numbers = #tpu.dot_dimension_numbers<[1], [0], [0], [1], [0, 0, 1, 1], [], []>} : vector<8x32xf32>, vector<32x32xf32>, vector<8x32xf32> -> vector<8x32xf32>
    %19 = arith.addf %17, %18 : vector<8x32xf32>
    %20 = math.tanh %19 : vector<8x32xf32>
    %c24 = arith.constant 24 : index
    %c0_17 = arith.constant 0 : index
    %21 = vector.load %arg9[%c24, %c0_17] : memref<64x32xf32, #tpu.memory_space<vmem>>, vector<8x32xf32>
    %cst_18 = arith.constant dense<0.000000e+00> : vector<8x32xf32>
    %22 = tpu.matmul %20, %7, %cst_18 {dimension_numbers = #tpu.dot_dimension_numbers<[1], [0], [0], [1], [0, 0, 1, 1], [], []>} : vector<8x32xf32>, vector<32x32xf32>, vector<8x32xf32> -> vector<8x32xf32>
    %23 = arith.addf %21, %22 : vector<8x32xf32>
    %24 = math.tanh %23 : vector<8x32xf32>
    %c32 = arith.constant 32 : index
    %c0_19 = arith.constant 0 : index
    %25 = vector.load %arg9[%c32, %c0_19] : memref<64x32xf32, #tpu.memory_space<vmem>>, vector<8x32xf32>
    %cst_20 = arith.constant dense<0.000000e+00> : vector<8x32xf32>
    %26 = tpu.matmul %24, %7, %cst_20 {dimension_numbers = #tpu.dot_dimension_numbers<[1], [0], [0], [1], [0, 0, 1, 1], [], []>} : vector<8x32xf32>, vector<32x32xf32>, vector<8x32xf32> -> vector<8x32xf32>
    %27 = arith.addf %25, %26 : vector<8x32xf32>
    %28 = math.tanh %27 : vector<8x32xf32>
    %c40 = arith.constant 40 : index
    %c0_21 = arith.constant 0 : index
    %29 = vector.load %arg9[%c40, %c0_21] : memref<64x32xf32, #tpu.memory_space<vmem>>, vector<8x32xf32>
    %cst_22 = arith.constant dense<0.000000e+00> : vector<8x32xf32>
    %30 = tpu.matmul %28, %7, %cst_22 {dimension_numbers = #tpu.dot_dimension_numbers<[1], [0], [0], [1], [0, 0, 1, 1], [], []>} : vector<8x32xf32>, vector<32x32xf32>, vector<8x32xf32> -> vector<8x32xf32>
    %31 = arith.addf %29, %30 : vector<8x32xf32>
    %32 = math.tanh %31 : vector<8x32xf32>
    %c48 = arith.constant 48 : index
    %c0_23 = arith.constant 0 : index
    %33 = vector.load %arg9[%c48, %c0_23] : memref<64x32xf32, #tpu.memory_space<vmem>>, vector<8x32xf32>
    %cst_24 = arith.constant dense<0.000000e+00> : vector<8x32xf32>
    %34 = tpu.matmul %32, %7, %cst_24 {dimension_numbers = #tpu.dot_dimension_numbers<[1], [0], [0], [1], [0, 0, 1, 1], [], []>} : vector<8x32xf32>, vector<32x32xf32>, vector<8x32xf32> -> vector<8x32xf32>
    %35 = arith.addf %33, %34 : vector<8x32xf32>
    %36 = math.tanh %35 : vector<8x32xf32>
    %c56 = arith.constant 56 : index
    %c0_25 = arith.constant 0 : index
    %37 = vector.load %arg9[%c56, %c0_25] : memref<64x32xf32, #tpu.memory_space<vmem>>, vector<8x32xf32>
    %cst_26 = arith.constant dense<0.000000e+00> : vector<8x32xf32>
    %38 = tpu.matmul %36, %7, %cst_26 {dimension_numbers = #tpu.dot_dimension_numbers<[1], [0], [0], [1], [0, 0, 1, 1], [], []>} : vector<8x32xf32>, vector<32x32xf32>, vector<8x32xf32> -> vector<8x32xf32>
    %39 = arith.addf %37, %38 : vector<8x32xf32>
    %40 = math.tanh %39 : vector<8x32xf32>
    %c0_27 = arith.constant 0 : index
    %c0_28 = arith.constant 0 : index
    %41 = vector.load %arg4[%c0_27, %c0_28] : memref<32x20xf32, #tpu.memory_space<vmem>>, vector<32x20xf32>
    %cst_29 = arith.constant dense<0.000000e+00> : vector<8x20xf32>
    %42 = tpu.matmul %40, %41, %cst_29 {dimension_numbers = #tpu.dot_dimension_numbers<[1], [0], [0], [1], [0, 0, 1, 1], [], []>} : vector<8x32xf32>, vector<32x20xf32>, vector<8x20xf32> -> vector<8x20xf32>
    %c0_30 = arith.constant 0 : index
    %c0_31 = arith.constant 0 : index
    %43 = vector.load %arg5[%c0_30, %c0_31] : memref<1x20xf32, #tpu.memory_space<vmem>>, vector<1x20xf32>
    %44 = vector.broadcast %43 : vector<1x20xf32> to vector<8x20xf32>
    %45 = arith.addf %42, %44 : vector<8x20xf32>
    %46 = math.tanh %45 : vector<8x20xf32>
    %c0_32 = arith.constant 0 : index
    %c0_33 = arith.constant 0 : index
    %47 = vector.load %arg6[%c0_32, %c0_33] : memref<1x20xf32, #tpu.memory_space<vmem>>, vector<1x20xf32>
    %48 = vector.broadcast %47 : vector<1x20xf32> to vector<8x20xf32>
    %49 = arith.mulf %46, %48 : vector<8x20xf32>
    %cst_34 = arith.constant dense<0.000000e+00> : vector<8xf32>
    %50 = vector.multi_reduction <add>, %49, %cst_34 [1] : vector<8x20xf32> to vector<8xf32>
    %51 = vector.shape_cast %50 : vector<8xf32> to vector<8x1xf32>
    %c0_35 = arith.constant 0 : index
    %c0_36 = arith.constant 0 : index
    %52 = vector.load %arg7[%c0_35, %c0_36] : memref<1x1xf32, #tpu.memory_space<vmem>>, vector<1x1xf32>
    %53 = vector.broadcast %52 : vector<1x1xf32> to vector<8x1xf32>
    %54 = arith.addf %51, %53 : vector<8x1xf32>
    %55 = vector.extract_strided_slice %54 {offsets = [0, 0], sizes = [2, 1], strides = [1, 1]} : vector<8x1xf32> to vector<2x1xf32>
    %c0_37 = arith.constant 0 : index
    %c0_38 = arith.constant 0 : index
    %56 = vector.load %arg8[%c0_37, %c0_38] : memref<2x1xf32, #tpu.memory_space<vmem>>, vector<2x1xf32>
    tpu.vector_store %arg8[%c0_37, %c0_38], %55 {strides = array<i32>} : memref<2x1xf32, #tpu.memory_space<vmem>>, vector<2x1xf32>,
    return
  }
}

</mosaic_0001>

<bundles_post_ra>
// kernel: tpu_custom_call.1
= control target key start
LH: loop header
LB: loop body
LE: loop exit
PB: predicated region body
PF: predicated region fallthrough
CT: control target
= control target key end

     0   :  { %vm48_vm0 = vcmask 130048   ;;  %v1179_v3 = vmov 0.0|0.0   ;;  %vm1180_vm1 = vmmov 0   ;;  %v1181_v4 = vmov 0.0   ;;  %s1377_s1 = inlined_call_operand.vmem [shape: f32[16,32], index: 1, kind: input, shape index: {}]   ;;  %s1378_s0 = inlined_call_operand.vmem [shape: f32[64,16], index: 0, kind: input, shape index: {}]   ;;  %s1379_s2 = inlined_call_operand.vmem [shape: f32[32,32], index: 2, kind: input, shape index: {}]   ;;  %s1380_s3 = inlined_call_operand.vmem [shape: f32[1,32], index: 3, kind: input, shape index: {}]   ;;  %s1381_s4 = inlined_call_operand.vmem [shape: f32[32,20], index: 4, kind: input, shape index: {}]   ;;  %s1382_s7 = inlined_call_operand.<no memory space> [shape: f32[1,1], index: 7, kind: input, shape index: {}]   ;;  %s1383_s5 = inlined_call_operand.vmem [shape: f32[1,20], index: 5, kind: input, shape index: {}]   ;;  %s1384_s6 = inlined_call_operand.vmem [shape: f32[1,20], index: 6, kind: input, shape index: {}]   ;;  %s1385_s8 = inlined_call_operand.vmem [shape: f32[2,1], index: 8, kind: output, shape index: {}]  }
   0x1   :  { %v39_v0 = vld [vmem:[%s1377_s1] sm:$0xff]  ;;  %v40_v1 = vld [vmem:[%s1377_s1 + $0x8] sm:$0xff]  ;;  %1104 = vmatprep.subr.bf16.mxu1 %v1179_v3  ;;  %1009 = vmatprep.mubr.msk.f32.mxu1 %vm1180_vm1, %v1181_v4  ;;  %v189_v9 = vld [vmem:[%s1379_s2 + $0x10] sm:$0xff]  ;;  %vm178_vm2 = vcmask 261120   ;;  %vm892_vm3 = vcmask 162816   ;;  %vm904_vm4 = vcmask 1024  }
   0x2   :  { %v31_v2 = vld [vmem:[%s1378_s0] sm:$0xff]  ;;  %v1100_v5 = vpack.c.bf16 %v40_v1, %v39_v0  ;;  %v188_v7 = vld [vmem:[%s1379_s2 + $0x8] sm:$0xff]  ;;  %v190_v10 = vld [vmem:[%s1379_s2 + $0x18] sm:$0xff] }
   0x3   :  { %989 = vmatprep.mubr.msk.f32.mxu0 %vm48_vm0, %v31_v2  ;;  %v187_v6 = vld [vmem:[%s1379_s2] sm:$0xff]  ;;  %v32_v11 = vld [vmem:[%s1378_s0 + $0x8] sm:$0xff]  ;;  %v1258_v12 = vpack.c.bf16 %v190_v10, %v189_v9  ;;  %v33_v13 = vld [vmem:[%s1378_s0 + $0x10] sm:$0xff] }
   0x4   :  { %v1246_v8 = vpack.c.bf16 %v188_v7, %v187_v6  ;;  %1101 = vmatprep.subr.bf16.mxu0 %v1100_v5  ;;  %v910_v14 = vld [vmem:[%s1380_s3] ss:$0 sm:$0xff]  ;;  %v34_v24 = vld [vmem:[%s1378_s0 + $0x18] sm:$0xff]  ;;  %v36_v26 = vld [vmem:[%s1378_s0 + $0x28] sm:$0xff] }
   0x5   :  { %1103 = vmatpush3.bf16.msra.mxu0 %v1100_v5  ;;  %v35_v25 = vld [vmem:[%s1378_s0 + $0x20] sm:$0xff]  ;;  %v37_v27 = vld [vmem:[%s1378_s0 + $0x30] sm:$0xff]  ;;  %v38_v28 = vld [vmem:[%s1378_s0 + $0x38] sm:$0xff] }
   0x6   :  { %1106 = vmatpush3.bf16.msra.mxu1 %v1246_v8  ;;  %1116 = vmatprep.subr.bf16.mxu0 %v1179_v3  ;;  %v799_v9 = vld [vmem:[%s1381_s4] sm:$0xff]  ;;  %v800_v10 = vld [vmem:[%s1381_s4 + $0x8] sm:$0xff] }
   0x7   :  { %1107 = vmatprep.subr.bf16.mxu1 %v1179_v3 }
   0x8   :  { %990 = vmatmul.mubr.msk.f32.vlgmr.msra.gmra.mrb[0].mxu0 %vm48_vm0, %v32_v11  ;;  %v1153_v11 = vpack.c.bf16 %v800_v10, %v799_v9 }
   0x9   :  { %1118 = vmatpush3.bf16.msra.mxu0 %v1246_v8  ;;  %992 = vmatprep.mubr.msk.f32.mxu0 %vm48_vm0, %v33_v13 }
   0xa   :  { %1109 = vmatpush3.bf16.msra.mxu1 %v1258_v12  ;;  %1119 = vmatprep.subr.bf16.mxu0 %v1179_v3 }
   0xb   :  { %1110 = vmatprep.subr.bf16.mxu1 %v1179_v3 }
   0xc   :  { %993 = vmatmul.mubr.msk.f32.gmra.mrb[2].mxu0 %vm48_vm0, %v34_v24 }
   0xd   :  { %1010 = vmatmul.mubr.f32.vlgmr.msra.gmra.mrb[0].mxu1 %v1181_v4  ;;  %1121 = vmatpush3.bf16.msra.mxu0 %v1258_v12 }
   0xe   :  { %1112 = vmatpush3.bf16.msra.mxu1 %v1246_v8  ;;  %1020 = vmatprep.mubr.msk.f32.mxu1 %vm1180_vm1, %v1181_v4 }
   0xf   :  { %1113 = vmatprep.subr.bf16.mxu1 %v1179_v3  ;;  %1128 = vmatprep.subr.bf16.mxu0 %v1179_v3 }
  0x10   :  { %995 = vmatprep.mubr.msk.f32.mxu0 %vm48_vm0, %v35_v25 }
  0x11   :  { %996 = vmatmul.mubr.msk.f32.gmra.mrb[4].mxu0 %vm48_vm0, %v36_v26 }
  0x12   :  { %1115 = vmatpush3.bf16.msra.mxu1 %v1258_v12  ;;  %998 = vmatprep.mubr.msk.f32.mxu0 %vm48_vm0, %v37_v27 }
  0x13   :  { %1122 = vmatprep.subr.bf16.mxu1 %v1179_v3 }
  0x15   :  { %999 = vmatmul.mubr.msk.f32.gmra.mrb[6].mxu0 %vm48_vm0, %v38_v28 }
  0x16   :  { %1031 = vmatprep.mubr.msk.f32.mxu0 %vm1180_vm1, %v1181_v4 }
  0xdb   :  { %v991_v15 = vpop.f32.mrb[0].mxu0 }
  0xdc   :  { %v145_v16 = vadd.f32 %v991_v15, %v910_v14  ;;  %v139_v17 = vpop.f32.mrb[1].mxu0 }
  0xdd   :  { %v140_v18 = vadd.f32 %v910_v14, %v139_v17 }
  0xde   :  { %180 = vst.msk [vmem:[#allocation2 + $0x8] sm:$0xff] %vm178_vm2, %v145_v16 }
  0xdf   :  { %179 = vst.msk [vmem:[#allocation2] sm:$0xff] %vm178_vm2, %v140_v18  ;;  %v994_v34 = vpop.f32.mrb[2].mxu0 }
  0xe0   :  { %v261_v19 = vpop.f32.mrb[0].mxu1  ;;  %v155_v35 = vadd.f32 %v994_v34, %v910_v14  ;;  %v149_v36 = vpop.f32.mrb[3].mxu0 }
  0xe1   :  { %v1011_v20 = vpop.f32.mrb[1].mxu1  ;;  %v150_v37 = vadd.f32 %v910_v14, %v149_v36 }
  0xe2   :  { %182 = vst.msk [vmem:[#allocation2 + $0x18] sm:$0xff] %vm178_vm2, %v155_v35  ;;  %v926_v20 = vld [vmem:[%s1383_s5] ss:$0 sm:$0xff] }
  0xe3   :  { %181 = vst.msk [vmem:[#allocation2 + $0x10] sm:$0xff] %vm178_vm2, %v150_v37 }
  0xe4   :  { %v997_v38 = vpop.f32.mrb[4].mxu0 }
  0xe5   :  { %v267_v29 = vld [vmem:[#allocation2 + $0x8] sm:$0xff]  ;;  %v165_v39 = vadd.f32 %v997_v38, %v910_v14  ;;  %v159_v40 = vpop.f32.mrb[5].mxu0 }
  0xe6   :  { %v191_v21 = vld [vmem:[#allocation2] sm:$0xff]  ;;  %v160_v41 = vadd.f32 %v910_v14, %v159_v40 }
  0xe7   :  { %v265_v22 = vadd.f32 %v261_v19, %v191_v21  ;;  %184 = vst.msk [vmem:[#allocation2 + $0x28] sm:$0xff] %vm178_vm2, %v165_v39  ;;  %v13_v19 = vstv %s1382_s7 }
  0xe8   :  { %183 = vst.msk [vmem:[#allocation2 + $0x20] sm:$0xff] %vm178_vm2, %v160_v41  ;;  %v1000_v42 = vpop.f32.mrb[6].mxu0  ;;  %14 = vst [vmem:[#allocation3] sm:$0x1] %v13_v19 }
  0xe9   :  { %1161 = vtanh.f32 %v265_v22  ;;  %v175_v43 = vadd.f32 %v1000_v42, %v910_v14  ;;  %v169_v44 = vpop.f32.mrb[7].mxu0  ;;  %v419_v51 = vld [vmem:[#allocation2 + $0x18] sm:$0xff] }
  0xea   :  { %v170_v45 = vadd.f32 %v910_v14, %v169_v44  ;;  %v343_v46 = vld [vmem:[#allocation2 + $0x10] sm:$0xff] }
  0xeb   :  { %186 = vst.msk [vmem:[#allocation2 + $0x38] sm:$0xff] %vm178_vm2, %v175_v43 }
  0xec   :  { %185 = vst.msk [vmem:[#allocation2 + $0x30] sm:$0xff] %vm178_vm2, %v170_v45 }
  0xee   :  { %v571_v61 = vld [vmem:[#allocation2 + $0x28] sm:$0xff] }
  0xef   :  { %v495_v56 = vld [vmem:[#allocation2 + $0x20] sm:$0xff] }
  0xf0   :  { %v929_v27 = vld [vmem:[#allocation3] ss:$0 sm:$0xff] }
  0xf2   :  { %v723_v14 = vld [vmem:[#allocation2 + $0x38] sm:$0xff] }
  0xf3   :  { %v1162_v23 = vpop.eup %1161  ;;  %v647_v2 = vld [vmem:[#allocation2 + $0x30] sm:$0xff] }
  0xf4   :  { %1021 = vmatmul.mubr.msk.f32.vlgmr.msra.gmra.mrb[2].mxu1 %vm178_vm2, %v1162_v23  ;;  %v928_v23 = vld [vmem:[%s1384_s6] ss:$0 sm:$0xff] }
  0xf5   :  { %1124 = vmatpush3.bf16.msra.mxu1 %v1246_v8  ;;  %1042 = vmatprep.mubr.msk.f32.mxu1 %vm1180_vm1, %v1181_v4 }
  0xf6   :  { %1125 = vmatprep.subr.bf16.mxu1 %v1179_v3 }
  0xf9   :  { %1127 = vmatpush3.bf16.msra.mxu1 %v1258_v12 }
  0xfa   :  { %1134 = vmatprep.subr.bf16.mxu1 %v1179_v3 }
 0x1c7   :  { %v337_v30 = vpop.f32.mrb[2].mxu1 }
 0x1c8   :  { %v341_v31 = vadd.f32 %v337_v30, %v267_v29  ;;  %v1022_v32 = vpop.f32.mrb[3].mxu1 }
 0x1ca   :  { %1163 = vtanh.f32 %v341_v31 }
 0x1d4   :  { %v1164_v33 = vpop.eup %1163 }
 0x1d5   :  { %1032 = vmatmul.mubr.msk.f32.vlgmr.msra.gmra.mrb[8].mxu0 %vm178_vm2, %v1164_v33 }
 0x1d6   :  { %1130 = vmatpush3.bf16.msra.mxu0 %v1246_v8  ;;  %1053 = vmatprep.mubr.msk.f32.mxu0 %vm1180_vm1, %v1181_v4 }
 0x1d7   :  { %1131 = vmatprep.subr.bf16.mxu0 %v1179_v3 }
 0x1da   :  { %1133 = vmatpush3.bf16.msra.mxu0 %v1258_v12 }
 0x1db   :  { %1140 = vmatprep.subr.bf16.mxu0 %v1179_v3 }
 0x2a8   :  { %v413_v47 = vpop.f32.mrb[8].mxu0 }
 0x2a9   :  { %v417_v48 = vadd.f32 %v413_v47, %v343_v46  ;;  %v1033_v49 = vpop.f32.mrb[9].mxu0 }
 0x2ab   :  { %1165 = vtanh.f32 %v417_v48 }
 0x2b5   :  { %v1166_v50 = vpop.eup %1165 }
 0x2b6   :  { %1043 = vmatmul.mubr.msk.f32.vlgmr.msra.gmra.mrb[4].mxu1 %vm178_vm2, %v1166_v50 }
 0x2b7   :  { %1136 = vmatpush3.bf16.msra.mxu1 %v1246_v8  ;;  %1064 = vmatprep.mubr.msk.f32.mxu1 %vm1180_vm1, %v1181_v4 }
 0x2b8   :  { %1137 = vmatprep.subr.bf16.mxu1 %v1179_v3 }
 0x2bb   :  { %1139 = vmatpush3.bf16.msra.mxu1 %v1258_v12 }
 0x2bc   :  { %1146 = vmatprep.subr.bf16.mxu1 %v1179_v3 }
 0x389   :  { %v489_v52 = vpop.f32.mrb[4].mxu1 }
 0x38a   :  { %v493_v53 = vadd.f32 %v489_v52, %v419_v51  ;;  %v1044_v54 = vpop.f32.mrb[5].mxu1 }
 0x38c   :  { %1167 = vtanh.f32 %v493_v53 }
 0x396   :  { %v1168_v55 = vpop.eup %1167 }
 0x397   :  { %1054 = vmatmul.mubr.msk.f32.vlgmr.msra.gmra.mrb[10].mxu0 %vm178_vm2, %v1168_v55 }
 0x398   :  { %1142 = vmatpush3.bf16.msra.mxu0 %v1246_v8  ;;  %1075 = vmatprep.mubr.msk.f32.mxu0 %vm1180_vm1, %v1181_v4 }
 0x399   :  { %1143 = vmatprep.subr.bf16.mxu0 %v1179_v3 }
 0x39c   :  { %1145 = vmatpush3.bf16.msra.mxu0 %v1258_v12 }
 0x39d   :  { %1152 = vmatprep.subr.bf16.mxu0 %v1179_v3 }
 0x46a   :  { %v565_v57 = vpop.f32.mrb[10].mxu0 }
 0x46b   :  { %v569_v58 = vadd.f32 %v565_v57, %v495_v56  ;;  %v1055_v59 = vpop.f32.mrb[11].mxu0 }
 0x46d   :  { %1169 = vtanh.f32 %v569_v58 }
 0x477   :  { %v1170_v60 = vpop.eup %1169 }
 0x478   :  { %1065 = vmatmul.mubr.msk.f32.vlgmr.msra.gmra.mrb[6].mxu1 %vm178_vm2, %v1170_v60 }
 0x479   :  { %1148 = vmatpush3.bf16.msra.mxu1 %v1246_v8  ;;  %1086 = vmatprep.mubr.msk.f32.mxu1 %vm1180_vm1, %v1181_v4 }
 0x47a   :  { %1149 = vmatprep.subr.bf16.mxu1 %v1179_v3 }
 0x47d   :  { %1151 = vmatpush3.bf16.msra.mxu1 %v1258_v12  ;;  %v802_v12 = vld [vmem:[%s1381_s4 + $0x18] sm:$0xff] }
 0x54b   :  { %v641_v62 = vpop.f32.mrb[6].mxu1 }
 0x54c   :  { %v645_v63 = vadd.f32 %v641_v62, %v571_v61  ;;  %v1066_v0 = vpop.f32.mrb[7].mxu1 }
 0x54e   :  { %1171 = vtanh.f32 %v645_v63 }
 0x558   :  { %v1172_v1 = vpop.eup %1171 }
 0x559   :  { %1076 = vmatmul.mubr.msk.f32.vlgmr.msra.gmra.mrb[12].mxu0 %vm178_vm2, %v1172_v1 }
 0x55a   :  { %1097 = vmatprep.mubr.msk.f32.mxu0 %vm1180_vm1, %v1181_v4  ;;  %v801_v4 = vld [vmem:[%s1381_s4 + $0x10] sm:$0xff]  ;;  %1154 = vmatpush3.bf16.msra.mxu0 %v1153_v11 }
 0x55b   :  { %v1156_v13 = vpack.c.bf16 %v802_v12, %v801_v4  ;;  %1155 = vmatprep.subr.bf16.mxu0 %v1179_v3 }
 0x55e   :  { %1157 = vmatpush3.bf16.msra.mxu0 %v1156_v13 }
 0x62c   :  { %v717_v5 = vpop.f32.mrb[12].mxu0 }
 0x62d   :  { %v721_v6 = vadd.f32 %v717_v5, %v647_v2  ;;  %v1077_v7 = vpop.f32.mrb[13].mxu0 }
 0x62f   :  { %1173 = vtanh.f32 %v721_v6 }
 0x639   :  { %v1174_v8 = vpop.eup %1173 }
 0x63a   :  { %1087 = vmatmul.mubr.msk.f32.vlgmr.msra.gmra.mrb[8].mxu1 %vm178_vm2, %v1174_v8 }
 0x70d   :  { %v793_v15 = vpop.f32.mrb[8].mxu1 }
 0x70e   :  { %v797_v16 = vadd.f32 %v793_v15, %v723_v14  ;;  %v1088_v17 = vpop.f32.mrb[9].mxu1 }
 0x710   :  { %1175 = vtanh.f32 %v797_v16 }
 0x71a   :  { %v1176_v18 = vpop.eup %1175 }
 0x71b   :  { %1098 = vmatmul.mubr.msk.f32.vlgmr.msra.gmra.mrb[14].mxu0 %vm178_vm2, %v1176_v18 }
 0x7ee   :  { %v879_v21 = vpop.f32.mrb[14].mxu0 }
 0x7ef   :  { %v880_v3 = vadd.f32 %v926_v20, %v879_v21  ;;  %v1099_v22 = vpop.f32.mrb[15].mxu0 }
 0x7f1   :  { %1177 = vtanh.f32 %v880_v3 }
 0x7fb   :  { %v1178_v24 = vpop.eup %1177 }
 0x7fc   :  { %v891_v25 = vmul.f32 %v1178_v24, %v928_v23 }
 0x7fe   :  { %v893_v26 = vsel %vm892_vm3, %v891_v25, 0.0 }
 0x7ff   :  { %894 = vadd.xlane.f32.xlu0 %v893_v26 }
 0x88c   :  { %v895_v28 = vpop.xlane.xlu0 %894 }
 0x88d   :  { %v903_v29 = vadd.f32 %v929_v27, %v895_v28 }
 0x88f   :  { %905 = vst.msk [vmem:[%s1385_s8] sm:$0x3] %vm904_vm4, %v903_v29 }

</bundles_post_ra>
